<compile_context>
chip_gen: v7x
topology: tpu7x:2x2x1
jax: 0.10.0
libtpu: 0.0.40
codegen_flags: <defaults>
</compile_context>

<pallas_src>
import functools

import jax
import jax.numpy as jnp
from jax.experimental import pallas as pl
from jax.experimental.pallas import tpu as pltpu


def _round_up(x, m):
    return ((x + m - 1) // m) * m


def _auto_class_tile(n_cls, n_ctx, d, itemsize, slab_budget_bytes):
    """Largest class tile whose padded VMEM slab fits the budget."""
    # Sublane packing: 8 rows (4B), 16 rows (2B), 32 rows (1B); lanes pad to 128.
    sub = max(8, 32 // max(1, itemsize))
    per_class = _round_up(n_ctx, sub) * _round_up(d, 128) * itemsize
    tile = max(1, slab_budget_bytes // per_class)
    tile = min(tile, n_cls)
    if tile >= n_cls and n_cls >= 2:
        # Keep >= 2 grid steps so step i+1's issue/overhead overlaps DMA i.
        tile = (n_cls + 1) // 2
    return max(1, int(tile))


def _ctx_scatter_kernel(ctx_ref, emb_hbm, out_hbm, slab, sems, *,
                        n_ctx, class_tile, num_tiles, last_tile):
    # ctx_ref : (n_ctx, D)            VMEM, shared ctx (constant block, fetched once)
    # emb_hbm : (n_cls, L, D)  HBM (ANY) aliased to out_hbm; never touched
    # out_hbm : (n_cls, L, D)  HBM (ANY) full token embedding; only ctx rows written
    # slab    : (class_tile, n_ctx, D) VMEM scratch, ctx replicated per class
    # sems    : DMA semaphores (2,)    double-buffered in-flight copies
    del emb_hbm
    i = pl.program_id(0)
    slot = i % 2

    @pl.when(i == 0)
    def _init_slab():
        ctx_val = ctx_ref[...].astype(slab.dtype)

        # Rolled per-class store keeps register pressure tiny (no (C, n_ctx, D)
        # broadcast slab in vregs).
        @pl.loop(0, class_tile)
        def _(c):
            slab[c] = ctx_val

    def tile_copy(tile_idx, size, sem_slot):
        cstart = pl.multiple_of(tile_idx * class_tile, class_tile)
        return pltpu.make_async_copy(
            slab.at[pl.ds(0, size)],
            out_hbm.at[pl.ds(cstart, size), pl.ds(1, n_ctx), :],
            sems.at[sem_slot],
        )

    # Start this step's strided write (slab -> rows [1, 1+n_ctx) of `size`
    # consecutive classes).  The last tile may be ragged (static at trace time).
    if last_tile == class_tile:
        tile_copy(i, class_tile, slot).start()
    else:
        @pl.when(i < num_tiles - 1)
        def _():
            tile_copy(i, class_tile, slot).start()

        @pl.when(i == num_tiles - 1)
        def _():
            tile_copy(i, last_tile, slot).start()

    # Hide this step's overhead under the previous transfer: wait the copy
    # started at step i-1 (always a full tile).
    @pl.when(i > 0)
    def _():
        tile_copy(i - 1, class_tile, 1 - slot).wait()

    # Drain the final in-flight copy.
    @pl.when(i == num_tiles - 1)
    def _():
        tile_copy(i, last_tile, slot).wait()


def prompt_learner_coop_forward(ctx, token_embedding, n_ctx, *,
                                class_tile=None, vmem_limit_bytes=None):
    """Pallas PromptLearner_CoOp.forward (position='end').

    Args:
      ctx:             (n_ctx, ctx_dim) learnable context vectors.
      token_embedding: (n_cls, L, ctx_dim) token embeddings of the tokenized
                       prompts ("X"*n_ctx + classname); aliased in-place.
      n_ctx:           number of context tokens.
      class_tile:      classes per grid step (auto-sized if None).
      vmem_limit_bytes: scoped VMEM limit passed to Mosaic.

    Returns:
      prompts: (n_cls, L, ctx_dim) == cat([prefix, ctx, suffix], dim=1).
    """
    n_cls, seq_len, d = token_embedding.shape
    assert ctx.shape == (n_ctx, d), (ctx.shape, (n_ctx, d))
    assert seq_len > 1 + n_ctx, "prompt must contain SOS + ctx + at least EOS"

    out_dtype = token_embedding.dtype
    ctx = ctx.astype(out_dtype)
    itemsize = jnp.dtype(out_dtype).itemsize

    if vmem_limit_bytes is None:
        vmem_limit_bytes = 32 * 1024 * 1024          # headroom even on v7x (64 MiB)
    if class_tile is None:
        class_tile = _auto_class_tile(
            n_cls, n_ctx, d, itemsize, slab_budget_bytes=4 * 1024 * 1024)
    class_tile = max(1, min(int(class_tile), n_cls))

    num_tiles = (n_cls + class_tile - 1) // class_tile
    last_tile = n_cls - (num_tiles - 1) * class_tile

    bytes_accessed = (n_ctx * d + n_cls * n_ctx * d) * itemsize

    kernel = functools.partial(
        _ctx_scatter_kernel, n_ctx=n_ctx, class_tile=class_tile,
        num_tiles=num_tiles, last_tile=last_tile)

    return pl.pallas_call(
        kernel,
        out_shape=jax.ShapeDtypeStruct((n_cls, seq_len, d), out_dtype),
        grid_spec=pltpu.PrefetchScalarGridSpec(
            num_scalar_prefetch=0,
            grid=(num_tiles,),
            in_specs=[
                # shared ctx: constant block index -> fetched once, reused
                pl.BlockSpec((n_ctx, d), lambda i: (0, 0)),
                # full embedding buffer: stays in HBM, aliased to the output
                pl.BlockSpec(memory_space=pl.ANY),
            ],
            out_specs=pl.BlockSpec(memory_space=pl.ANY),
            scratch_shapes=[
                pltpu.VMEM((class_tile, n_ctx, d), out_dtype),
                pltpu.SemaphoreType.DMA((2,)),
            ],
        ),
        input_output_aliases={1: 0},
        compiler_params=pltpu.CompilerParams(
            # cross-step semaphore dependency -> must stay sequential
            dimension_semantics=("arbitrary",),
            vmem_limit_bytes=vmem_limit_bytes,
            has_side_effects=True,
        ),
        cost_estimate=pl.CostEstimate(
            flops=0, transcendentals=0, bytes_accessed=bytes_accessed),
    )(ctx, token_embedding)


if __name__ == "__main__":
    # Small deterministic setup consistent with the module's __init__:
    #   n_ctx   = 16 ("X X ... X" generic context, the canonical CoOp value)
    #   ctx_dim = 128 (multiple of 128 so lanes are dense; real CLIP D=512)
    #   seq_len = 1 (SOS) + n_ctx + suffix rows (classname/EOS/pad); CLIP uses 77
    n_cls, n_ctx, ctx_dim, seq_len = 10, 16, 128, 25
    dtype = jnp.float32

    key = jax.random.PRNGKey(0)
    k_ctx, k_emb = jax.random.split(key)

    # ctx ~ Normal(0, 0.02)   (nn.init.normal_(ctx_vectors, std=0.02))
    ctx = 0.02 * jax.random.normal(k_ctx, (n_ctx, ctx_dim), dtype=dtype)

    # Synthetic token embeddings of the tokenized prompts (normally produced by
    # clip_model.token_embedding); the module's registered buffers are slices.
    embedding = jax.random.normal(k_emb, (n_cls, seq_len, ctx_dim), dtype=dtype)
    token_prefix = embedding[:, :1, :]            # (n_cls, 1, D)
    token_suffix = embedding[:, 1 + n_ctx:, :]    # (n_cls, L-1-n_ctx, D)

    # Reference — same semantics as torch.cat([prefix, ctx, suffix], dim=1).
    ref = jnp.concatenate(
        [token_prefix,
         jnp.broadcast_to(ctx[None, :, :], (n_cls, n_ctx, ctx_dim)),
         token_suffix],
        axis=1,
    )

    # 1) Auto-sized class tile (>= 2 pipelined grid steps).
    p1 = jax.block_until_ready(prompt_learner_coop_forward(ctx, embedding, n_ctx))
    assert p1.shape == (n_cls, seq_len, ctx_dim)
    assert jnp.array_equal(p1, ref), "mismatch (auto tile)"

    # 2) Explicit small tile -> multi-step grid with a ragged last tile (10 % 4).
    p2 = jax.block_until_ready(
        prompt_learner_coop_forward(ctx, embedding, n_ctx, class_tile=4))
    assert jnp.array_equal(p2, ref), "mismatch (tile=4, ragged)"

    # 3) Single-tile grid (class_tile == n_cls).
    p3 = jax.block_until_ready(
        prompt_learner_coop_forward(ctx, embedding, n_ctx, class_tile=n_cls))
    assert jnp.array_equal(p3, ref), "mismatch (single tile)"

    print("KERNEL_OK")
</pallas_src>

<mosaic_0001>
module attributes {stable_mosaic.version = 11 : i64} {
  func.func @_ctx_scatter_kernel(%arg0: i32, %arg1: memref<16x128xf32, #tpu.memory_space<vmem>>, %arg2: memref<10x25x128xf32, #tpu.memory_space<any>>, %arg3: memref<10x25x128xf32, #tpu.memory_space<any>>, %arg4: memref<5x16x128xf32, #tpu.memory_space<vmem>>, %arg5: memref<2x!tpu.dma_semaphore, #tpu.memory_space<semaphore_mem>>) attributes {dimension_semantics = [#tpu.dimension_semantics<arbitrary>], iteration_bounds = array<i64: 2>, scalar_prefetch = 0 : i64, scratch_operands = 2 : i64, tpu.core_type = #tpu.core_type<tc>, window_params = [{pipeline_mode = #tpu.pipeline_mode<synchronous>, transform_indices = @transform_0, window_bounds = array<i64: 16, 128>}, {}, {}]} {
    %c2_i32 = arith.constant 2 : i32
    %c0_i32 = arith.constant 0 : i32
    %0 = arith.cmpi eq, %c2_i32, %c0_i32 : i32
    %c1_i32 = arith.constant 1 : i32
    %1 = arith.select %0, %c1_i32, %c2_i32 : i32
    %2 = arith.remsi %arg0, %1 : i32
    %c0_i32_0 = arith.constant 0 : i32
    %3 = arith.cmpi ne, %2, %c0_i32_0 : i32
    %c0_i32_1 = arith.constant 0 : i32
    %4 = arith.cmpi slt, %2, %c0_i32_1 : i32
    %c0_i32_2 = arith.constant 0 : i32
    %5 = arith.cmpi slt, %1, %c0_i32_2 : i32
    %6 = arith.xori %4, %5 : i1
    %7 = arith.andi %6, %3 : i1
    %8 = arith.addi %2, %1 : i32
    %9 = arith.select %7, %8, %2 : i32
    %c0_i32_3 = arith.constant 0 : i32
    %10 = arith.cmpi eq, %arg0, %c0_i32_3 : i32
    %11 = arith.extui %10 : i1 to i32
    %c0_i32_4 = arith.constant 0 : i32
    %12 = arith.cmpi ne, %11, %c0_i32_4 : i32
    scf.if %12 {
      %c0 = arith.constant 0 : index
      %c0_14 = arith.constant 0 : index
      %25 = vector.load %arg1[%c0, %c0_14] : memref<16x128xf32, #tpu.memory_space<vmem>>, vector<16x128xf32>
      %c0_i32_15 = arith.constant 0 : i32
      %c5_i32_16 = arith.constant 5 : i32
      %26 = arith.addi %c0_i32_15, %c5_i32_16 : i32
      %c1_i32_17 = arith.constant 1 : i32
      scf.for %arg6 = %c0_i32_15 to %26 step %c1_i32_17  : i32 {
        %c1_i32_19 = arith.constant 1 : i32
        %27 = arith.muli %arg6, %c1_i32_19 : i32
        %c0_i32_20 = arith.constant 0 : i32
        %28 = arith.addi %c0_i32_20, %27 : i32
        %29 = arith.index_cast %28 : i32 to index
        %c0_21 = arith.constant 0 : index
        %c0_22 = arith.constant 0 : index
        %30 = vector.load %arg4[%29, %c0_21, %c0_22] : memref<5x16x128xf32, #tpu.memory_space<vmem>>, vector<1x16x128xf32>
        %31 = vector.shape_cast %30 : vector<1x16x128xf32> to vector<16x128xf32>
        %32 = vector.shape_cast %25 : vector<16x128xf32> to vector<1x16x128xf32>
        tpu.vector_store %arg4[%29, %c0_21, %c0_22], %32 {strides = array<i32>} : memref<5x16x128xf32, #tpu.memory_space<vmem>>, vector<1x16x128xf32>,
      }
      %c5_i32_18 = arith.constant 5 : i32
    } else {
    }
    %c5_i32 = arith.constant 5 : i32
    %13 = arith.muli %arg0, %c5_i32 : i32
    %14 = tpu.assume_multiple %13, 5 : i32
    %c0_i32_5 = arith.constant 0 : i32
    %c0_i32_6 = arith.constant 0 : i32
    %c0_i32_7 = arith.constant 0 : i32
    %15 = tpu.memref_slice %arg4[%c0_i32_5, %c0_i32_6, %c0_i32_7] : memref<5x16x128xf32, #tpu.memory_space<vmem>> -> memref<5x16x128xf32, #tpu.memory_space<vmem>>
    %c1_i32_8 = arith.constant 1 : i32
    %c0_i32_9 = arith.constant 0 : i32
    %16 = tpu.memref_slice %arg3[%14, %c1_i32_8, %c0_i32_9] : memref<10x25x128xf32, #tpu.memory_space<any>> -> memref<5x16x128xf32, #tpu.memory_space<any>>
    %17 = tpu.memref_slice %arg5[%9] : memref<2x!tpu.dma_semaphore, #tpu.memory_space<semaphore_mem>> -> memref<1x!tpu.dma_semaphore, #tpu.memory_space<semaphore_mem>>
    %18 = tpu.memref_squeeze %17 : memref<1x!tpu.dma_semaphore, #tpu.memory_space<semaphore_mem>> -> memref<!tpu.dma_semaphore, #tpu.memory_space<semaphore_mem>>
    tpu.enqueue_dma source(%15 : memref<5x16x128xf32, #tpu.memory_space<vmem>>) target(%16 : memref<5x16x128xf32, #tpu.memory_space<any>>) target_semaphore(%18 : memref<!tpu.dma_semaphore, #tpu.memory_space<semaphore_mem>>)
    %c0_i32_10 = arith.constant 0 : i32
    %19 = arith.cmpi sgt, %arg0, %c0_i32_10 : i32
    %20 = arith.extui %19 : i1 to i32
    %c0_i32_11 = arith.constant 0 : i32
    %21 = arith.cmpi ne, %20, %c0_i32_11 : i32
    scf.if %21 {
      %c1_i32_14 = arith.constant 1 : i32
      %25 = arith.subi %arg0, %c1_i32_14 : i32
      %c1_i32_15 = arith.constant 1 : i32
      %26 = arith.subi %c1_i32_15, %9 : i32
      %c5_i32_16 = arith.constant 5 : i32
      %27 = arith.muli %25, %c5_i32_16 : i32
      %28 = tpu.assume_multiple %27, 5 : i32
      %c0_i32_17 = arith.constant 0 : i32
      %c0_i32_18 = arith.constant 0 : i32
      %c0_i32_19 = arith.constant 0 : i32
      %29 = tpu.memref_slice %arg4[%c0_i32_17, %c0_i32_18, %c0_i32_19] : memref<5x16x128xf32, #tpu.memory_space<vmem>> -> memref<5x16x128xf32, #tpu.memory_space<vmem>>
      %c1_i32_20 = arith.constant 1 : i32
      %c0_i32_21 = arith.constant 0 : i32
      %30 = tpu.memref_slice %arg3[%28, %c1_i32_20, %c0_i32_21] : memref<10x25x128xf32, #tpu.memory_space<any>> -> memref<5x16x128xf32, #tpu.memory_space<any>>
      %31 = tpu.memref_slice %arg5[%26] : memref<2x!tpu.dma_semaphore, #tpu.memory_space<semaphore_mem>> -> memref<1x!tpu.dma_semaphore, #tpu.memory_space<semaphore_mem>>
      %32 = tpu.memref_squeeze %31 : memref<1x!tpu.dma_semaphore, #tpu.memory_space<semaphore_mem>> -> memref<!tpu.dma_semaphore, #tpu.memory_space<semaphore_mem>>
      tpu.wait_dma2 semaphore(%32 : memref<!tpu.dma_semaphore, #tpu.memory_space<semaphore_mem>>) src(%29 : memref<5x16x128xf32, #tpu.memory_space<vmem>>) dst(%30 : memref<5x16x128xf32, #tpu.memory_space<any>>)
    } else {
    }
    %c1_i32_12 = arith.constant 1 : i32
    %22 = arith.cmpi eq, %arg0, %c1_i32_12 : i32
    %23 = arith.extui %22 : i1 to i32
    %c0_i32_13 = arith.constant 0 : i32
    %24 = arith.cmpi ne, %23, %c0_i32_13 : i32
    scf.if %24 {
      %c5_i32_14 = arith.constant 5 : i32
      %25 = arith.muli %arg0, %c5_i32_14 : i32
      %26 = tpu.assume_multiple %25, 5 : i32
      %c0_i32_15 = arith.constant 0 : i32
      %c0_i32_16 = arith.constant 0 : i32
      %c0_i32_17 = arith.constant 0 : i32
      %27 = tpu.memref_slice %arg4[%c0_i32_15, %c0_i32_16, %c0_i32_17] : memref<5x16x128xf32, #tpu.memory_space<vmem>> -> memref<5x16x128xf32, #tpu.memory_space<vmem>>
      %c1_i32_18 = arith.constant 1 : i32
      %c0_i32_19 = arith.constant 0 : i32
      %28 = tpu.memref_slice %arg3[%26, %c1_i32_18, %c0_i32_19] : memref<10x25x128xf32, #tpu.memory_space<any>> -> memref<5x16x128xf32, #tpu.memory_space<any>>
      %29 = tpu.memref_slice %arg5[%9] : memref<2x!tpu.dma_semaphore, #tpu.memory_space<semaphore_mem>> -> memref<1x!tpu.dma_semaphore, #tpu.memory_space<semaphore_mem>>
      %30 = tpu.memref_squeeze %29 : memref<1x!tpu.dma_semaphore, #tpu.memory_space<semaphore_mem>> -> memref<!tpu.dma_semaphore, #tpu.memory_space<semaphore_mem>>
      tpu.wait_dma2 semaphore(%30 : memref<!tpu.dma_semaphore, #tpu.memory_space<semaphore_mem>>) src(%27 : memref<5x16x128xf32, #tpu.memory_space<vmem>>) dst(%28 : memref<5x16x128xf32, #tpu.memory_space<any>>)
    } else {
    }
    return
  }
  func.func @transform_0(%arg0: i32) -> (i32, i32) {
    %c0_i32 = arith.constant 0 : i32
    %c0_i32_0 = arith.constant 0 : i32
    %c0_i32_1 = arith.constant 0 : i32
    return %c0_i32, %c0_i32_0 : i32, i32
  }
}

</mosaic_0001>

<bundles_post_ra>
// kernel: tpu_custom_call.1
= control target key start
LH: loop header
LB: loop body
LE: loop exit
PB: predicated region body
PF: predicated region fallthrough
CT: control target
= control target key end

     0   :  { %s247_s9 = smov 0   ;;  %s285_s0 = inlined_call_operand.vmem [shape: f32[16,128], index: 0, kind: input, shape index: {}]   ;;  %s286_s1 = inlined_call_operand.hbm [shape: f32[10,25,128], index: 1, kind: input, shape index: {}, may-alias: {1,2}]   ;;  %s287_s2 = inlined_call_operand.hbm [shape: f32[10,25,128], index: 2, kind: output, shape index: {}, may-alias: {1,2}]  }
   0x1 LB: > { %s253_s10 = sadd.s32 4294967295, %s222_s9   ;;  %p142_p0 = scmp.lt.s32.totalorder %s222_s9, 1  ;;  %s222_s9 = sphi %s247_s9, %s12_s9  }
   0x2   : > { %p48_p1 = scmp.lt.s32.totalorder (!%p142_p0), %s253_s10, 0  ;;  %s49_s1 = ssub.s32 (!%p142_p0), 0, %s253_s10 }
   0x3   : > { %44 = sbr.rel (%p142_p0) target bundleno = 59 (0x3b), region = 24  ;;  %s143_s11 = smin.u32 (!%p142_p0), %s253_s10, %s49_s1 }
   0x4   : > { %s51_s12 = sand.u32 (!%p142_p0), 1, %s143_s11   ;;  %p146_p3 = scmp.ne.s32.totalorder (!%p142_p0), %s253_s10, 0 }
   0x5   : > { %s52_s13 = ssub.s32 (!%p142_p0), 0, %s51_s12 }
   0xa   : > { %s289_s13 = smov (!%p48_p1, %s52_s13), %s51_s12  ;;  %63 = sbr.rel (%p146_p3) target bundleno = 27 (0x1b), region = 28 }
   0xb   : > { %p145_p2 = scmp.lt.s32.totalorder %s289_s13, 0  ;;  %s58_s14 = sadd.s32 2, %s289_s13  ;;  %v64_v0 = vld [vmem:[%s285_s0] sm:$0xff] (!%p146_p3)  ;;  %v65_v1 = vld [vmem:[%s285_s0 + $0x8] sm:$0xff] (!%p146_p3) }
   0xc   : > { %s224_s19 = smov (!%p146_p3), 0  }
   0xd   : > { %s291_s14 = smov (!%p145_p2, %s58_s14), %s289_s13 }
  0x11 LB: >> { %s147_s20 = sshll.u32 %s226_s19, 4  ;;  %s71_s19 = sadd.s32 1, %s226_s19   ;;  %s226_s19 = sphi %s224_s19, %s71_s19  }
  0x12   : >> { %s73_s21 = scalar_lea.vmem [#allocation2], %s147_s20  ;;  %p68_p4 = scmp.ge.s32.totalorder %s71_s19, 5  }
  0x13   : >> { %74 = vst [vmem:[%s73_s21] sm:$0xff] %v64_v0  ;;  %75 = vst [vmem:[%s73_s21 + $0x8] sm:$0xff] %v65_v1 }
  0x14   : > { %70 = sbr.rel (!%p68_p4) target bundleno = 17 (0x11), region = 59 }
  0x1b PF: > { %s148_s22 = smul.u32 2560, %s253_s10  ;;  %s228_s26 = smov [#allocation2]  }
  0x1c   : > { %s83_s27 = sshll.u32 %s228_s26, 4  ;;  %s81_s29 = scalar_lea.sflag [#allocation3], %s291_s14  ;;  %s84_s27 = int_to_ptr.vmem [resolvable:$true] %s83_s27 }
  0x1d   : > { %s124_s25 = scalar_lea.hbm %s287_s2, %s148_s22  ;;  %s179_s30 = scalar_lea.vmem %s84_s27, 1280 }
  0x1e   : > { %s125_s28 = scalar_lea.hbm %s124_s25, 16  ;;  %p180_p5 = scmp.ne.s32.totalorder %s84_s27, %s179_s30 }
  0x1f   : > { %p184_p6 = scmp.lt.s32.totalorder %s84_s27, %s84_s27  ;;  %p185_p7 = scmp.lt.s32.totalorder %s179_s30, %s179_s30 }
  0x21   : > { %p186_p8 = por %p185_p7, %p184_p6 }
  0x23   : > { %p187_p9 = pnand %p186_p8, %p180_p5 }
  0x25   : > { %190 = shalt.err (!%p187_p9)  }
  0x26   : > { %s203_s3 = scalar_lea.hbm %s124_s25, 1296  ;;  %s193_s6 = scalar_lea.hbm %s287_s2, 5120 }
  0x27   : > { %p192_p10 = scmp.ne.s32.totalorder %s125_s28, %s203_s3  ;;  %p194_p11 = scmp.lt.u32.totalorder %s125_s28, %s287_s2 }
  0x28   : > { %p195_p12 = scmp.lt.u32.totalorder %s193_s6, %s203_s3  ;;  %p197_p0 = scmp.lt.u32.totalorder %s203_s3, %s125_s28 }
  0x2a   : > { %p196_p13 = por %p195_p12, %p194_p11 }
  0x2c   : > { %p198_p1 = por %p197_p0, %p196_p13 }
  0x2e   : > { %p199_p2 = pnand %p198_p1, %p192_p10 }
  0x30   : > { %202 = shalt.err (!%p199_p2)  }
  0x31   : > { %s229_s1 = smov 256   ;;  %s230_s11 = smov 512  }
  0x32   : > { %s231_s12 = smov 16   ;;  %p157_p3 = scmp.gt.s32.totalorder %s253_s10, 0 }
  0x33   : > { %86 = dma.vmem_to_hbm [thread:$0]  %s84_s27, 1280, %s125_s28, %s81_s29, %s229_s1, %s230_s11, %s231_s12 }
  0x34   : > { %s92_s13 = ssub.s32 1, %s291_s14 }
  0x35   : > { %s94_s15 = scalar_lea.sflag [#allocation3], %s92_s13 }
  0x36   : > { %213 = dma.done.wait (%p157_p3), %s94_s15, 1280 }
  0x37   : > { %215 = vsyncadd (%p157_p3), %s94_s15, 4294966016  ;;  %p158_p4 = scmp.eq.s32.totalorder %s253_s10, 1 }
  0x39   : > { %217 = dma.done.wait (%p158_p4), %s81_s29, 1280 }
  0x3a   : > { %219 = vsyncadd (%p158_p4), %s81_s29, 4294966016 }
  0x3b PF: > { %s12_s9 = sadd.s32 1, %s222_s9  }
  0x3c   : > { %p9_p5 = scmp.ge.s32.totalorder %s12_s9, 3  }
  0x3e   :  { %11 = sbr.rel (!%p9_p5) target bundleno = 1 (0x1), region = 70 }
  0x45   :  { %107 = vsyncmov [#allocation3] }
  0x48   :  { %s108_s16 = vpop.sfrf %107 }
  0x49   :  { %p151_p6 = scmp.ne.s32.totalorder %s108_s16, 0 }
  0x4b   :  { %112 = shalt.err (%p151_p6)  }
  0x4c   :  { %114 = vsyncmov [#allocation3 + $0x1] }
  0x4f   :  { %s115_s14 = vpop.sfrf %114 }
  0x50   :  { %p152_p7 = scmp.ne.s32.totalorder %s115_s14, 0 }
  0x52   :  { %119 = shalt.err (%p152_p7)  }

</bundles_post_ra>
